<compile_context>
chip_gen: v6e
topology: v6e:2x2x1
jax: 0.10.0
libtpu: 0.0.40
codegen_flags: <defaults>
</compile_context>

<pallas_src>
import functools

import jax
import jax.numpy as jnp
from jax.experimental import pallas as pl
from jax.experimental.pallas import tpu as pltpu


def _round_up(x, m):
    return ((x + m - 1) // m) * m


def _head_kernel(ent_ref, trig_ref, we_ref, wt_ref, b_ref, o_ref):
    # ent_ref/trig_ref: (TB, E)   we_ref/wt_ref: (E, TC)   b_ref: (1, TC) f32
    # o_ref: (TB, TC) out_dtype
    # Canonical (m,k)x(k,n) contraction: act @ w_half -- no in-kernel layout work.
    acc = jnp.dot(ent_ref[...], we_ref[...], preferred_element_type=jnp.float32)
    acc = acc + jnp.dot(trig_ref[...], wt_ref[...], preferred_element_type=jnp.float32)
    o_ref[...] = (acc + b_ref[...]).astype(o_ref.dtype)


def _vmem_budget_bytes():
    """~75% of per-core VMEM capacity; conservative fallback if query fails."""
    cap = None
    try:
        info = pltpu.get_tpu_info()
        cap = getattr(info, "vmem_capacity_bytes", None)
    except Exception:
        cap = None
    if not cap:
        cap = 64 * 1024 * 1024  # v7x per-TensorCore capacity (smallest generation)
    return int(cap * 0.75)


def meta_with_embedding_classifier(entity_encoding, trigger_encoding, weight, bias,
                                   *, block_b=1024, block_c=2048,
                                   compute_dtype=None, out_dtype=None):
    """Equivalent of: Linear(gate(entity, trigger)) with gate == concat.

    entity_encoding:  (B, E)
    trigger_encoding: (B, E)
    weight:           (C, 2E)   -- PyTorch nn.Linear layout
    bias:             (C,)
    compute_dtype:    optional dtype (e.g. jnp.bfloat16) for MXU operands;
                      accumulation is always f32.
    out_dtype:        logits dtype; defaults to the activation dtype.
    returns:          (B, C) logits
    """
    assert block_b % 8 == 0, "block_b must be a multiple of 8 (sublane constraint)"
    assert block_c % 128 == 0, "block_c must be a multiple of 128 (lane constraint)"

    B, E = entity_encoding.shape
    assert trigger_encoding.shape == (B, E)
    C, K = weight.shape
    assert K == 2 * E and bias.shape == (C,)

    if out_dtype is None:
        out_dtype = entity_encoding.dtype

    # Optional low-precision MXU operands (f32 accumulate in-kernel).
    if compute_dtype is not None:
        entity_encoding = entity_encoding.astype(compute_dtype)
        trigger_encoding = trigger_encoding.astype(compute_dtype)
        weight = weight.astype(compute_dtype)

    # --- one-time weight layout (hoisted out of the kernel, amortized in HBM) ---
    # (C, 2E) -> (2E, C_pad) -> split into (E, C_pad) halves; class dim padded
    # to a lane-dense multiple of 128 (zeros), sliced back after the call.
    C_pad = _round_up(C, 128)
    w_t = weight.T                                    # (2E, C)
    if C_pad != C:
        w_t = jnp.pad(w_t, ((0, 0), (0, C_pad - C)))
        bias_p = jnp.pad(bias, (0, C_pad - C))
    else:
        bias_p = bias
    w_ent = w_t[:E]                                   # (E, C_pad)
    w_trig = w_t[E:]                                  # (E, C_pad)
    bias2d = bias_p.reshape(1, C_pad).astype(jnp.float32)

    # --- tile selection ---
    # Batch tile: multiple of 8; >= 2 grid steps whenever B > 8 so the
    # "parallel" batch axis can shard across both TensorCores on v7x.
    if B <= 8:
        TB = B
    elif B <= block_b:
        TB = _round_up(pl.cdiv(B, 2), 8)
    else:
        TB = block_b
    # Class tile: multiple of 128, bounded so large-vocab heads stream.
    TC = min(C_pad, block_c)

    act_bytes = jnp.dtype(entity_encoding.dtype).itemsize
    w_bytes = jnp.dtype(weight.dtype).itemsize
    out_bytes = jnp.dtype(out_dtype).itemsize

    def vmem_need(tb, tc):
        return (2 * 2 * tb * E * act_bytes      # ent + trig tiles, double-buffered
                + 2 * 2 * E * tc * w_bytes      # two weight halves, double-buffered
                + 2 * 8 * tc * 4                # bias (1, tc) occupies 8 sublanes, dbl-buf
                + 2 * tb * tc * out_bytes)      # output tile, double-buffered

    budget = _vmem_budget_bytes()
    while vmem_need(TB, TC) > budget:
        if TC > 512:
            TC //= 2                            # stays a multiple of 128
        elif TB > 64:
            TB = max(64, TB // 2)               # stays a multiple of 8
        else:
            break
    need = vmem_need(TB, TC)
    vmem_limit = int(min(budget, max(2 * need, 16 * 1024 * 1024)))

    grid = (pl.cdiv(B, TB), pl.cdiv(C_pad, TC))

    cost = pl.CostEstimate(
        flops=2 * B * (2 * E) * C_pad,
        transcendentals=0,
        bytes_accessed=(B * 2 * E * act_bytes
                        + 2 * E * C_pad * w_bytes
                        + C_pad * 4
                        + B * C_pad * out_bytes),
    )

    out = pl.pallas_call(
        _head_kernel,
        out_shape=jax.ShapeDtypeStruct((B, C_pad), out_dtype),
        grid_spec=pltpu.PrefetchScalarGridSpec(
            num_scalar_prefetch=0,
            grid=grid,
            in_specs=[
                pl.BlockSpec((TB, E), lambda i, j: (i, 0)),   # entity tile (resident over j)
                pl.BlockSpec((TB, E), lambda i, j: (i, 0)),   # trigger tile (resident over j)
                pl.BlockSpec((E, TC), lambda i, j: (0, j)),   # weight half (entity)
                pl.BlockSpec((E, TC), lambda i, j: (0, j)),   # weight half (trigger)
                pl.BlockSpec((1, TC), lambda i, j: (0, j)),   # bias
            ],
            out_specs=pl.BlockSpec((TB, TC), lambda i, j: (i, j)),
        ),
        compiler_params=pltpu.CompilerParams(
            dimension_semantics=("parallel", "parallel"),
            vmem_limit_bytes=vmem_limit,
        ),
        cost_estimate=cost,
    )(entity_encoding, trigger_encoding, w_ent, w_trig, bias2d)

    return out[:, :C] if C_pad != C else out


if __name__ == "__main__":
    # Small, deterministic setup: batch=8, embed_dim=32, class_num=8
    batch, embed_dim, class_num = 8, 32, 8

    key = jax.random.PRNGKey(0)
    k_ent, k_trig, k_w, k_b = jax.random.split(key, 4)

    entity_encoding = jax.random.normal(k_ent, (batch, embed_dim), dtype=jnp.float32)
    trigger_encoding = jax.random.normal(k_trig, (batch, embed_dim), dtype=jnp.float32)

    # nn.Linear(2*embed_dim, class_num): weight (class_num, 2*embed_dim), bias (class_num,)
    fan_in = 2 * embed_dim
    bound = 1.0 / (fan_in ** 0.5)
    weight = jax.random.uniform(k_w, (class_num, fan_in), minval=-bound, maxval=bound,
                                dtype=jnp.float32)
    bias = jax.random.uniform(k_b, (class_num,), minval=-bound, maxval=bound,
                              dtype=jnp.float32)

    # Reference in plain JAX (gate == concat, then Linear).
    h = jnp.concatenate([entity_encoding, trigger_encoding], axis=-1)
    ref = h @ weight.T + bias

    # f32 path (exact, tight tolerance).
    out = meta_with_embedding_classifier(entity_encoding, trigger_encoding, weight, bias)
    out = jax.block_until_ready(out)
    assert out.shape == (batch, class_num)
    assert out.dtype == jnp.float32
    assert jnp.allclose(out, ref, atol=1e-5, rtol=1e-5)

    # bf16 MXU-operand path (f32 accumulate), looser tolerance.
    out_bf16 = meta_with_embedding_classifier(
        entity_encoding, trigger_encoding, weight, bias,
        compute_dtype=jnp.bfloat16, out_dtype=jnp.float32)
    out_bf16 = jax.block_until_ready(out_bf16)
    assert out_bf16.shape == (batch, class_num)
    assert jnp.allclose(out_bf16, ref, atol=5e-2, rtol=5e-2)

    print("KERNEL_OK")
</pallas_src>

<mosaic_0001>
module attributes {stable_mosaic.version = 11 : i64} {
  func.func @_head_kernel(%arg0: i32, %arg1: i32, %arg2: memref<8x32xf32, #tpu.memory_space<vmem>>, %arg3: memref<8x32xf32, #tpu.memory_space<vmem>>, %arg4: memref<32x128xf32, #tpu.memory_space<vmem>>, %arg5: memref<32x128xf32, #tpu.memory_space<vmem>>, %arg6: memref<1x128xf32, #tpu.memory_space<vmem>>, %arg7: memref<8x128xf32, #tpu.memory_space<vmem>>) attributes {dimension_semantics = [#tpu.dimension_semantics<parallel>, #tpu.dimension_semantics<parallel>], iteration_bounds = array<i64: 1, 1>, scalar_prefetch = 0 : i64, scratch_operands = 0 : i64, tpu.core_type = #tpu.core_type<tc>, window_params = [{transform_indices = @transform_0, window_bounds = array<i64: 8, 32>}, {transform_indices = @transform_1, window_bounds = array<i64: 8, 32>}, {transform_indices = @transform_2, window_bounds = array<i64: 32, 128>}, {transform_indices = @transform_3, window_bounds = array<i64: 32, 128>}, {transform_indices = @transform_4, window_bounds = array<i64: 1, 128>}, {transform_indices = @transform_5, window_bounds = array<i64: 8, 128>}]} {
    %c0 = arith.constant 0 : index
    %c0_0 = arith.constant 0 : index
    %0 = vector.load %arg2[%c0, %c0_0] : memref<8x32xf32, #tpu.memory_space<vmem>>, vector<8x32xf32>
    %c0_1 = arith.constant 0 : index
    %c0_2 = arith.constant 0 : index
    %1 = vector.load %arg4[%c0_1, %c0_2] : memref<32x128xf32, #tpu.memory_space<vmem>>, vector<32x128xf32>
    %cst = arith.constant dense<0.000000e+00> : vector<8x128xf32>
    %2 = tpu.matmul %0, %1, %cst {dimension_numbers = #tpu.dot_dimension_numbers<[1], [0], [0], [1], [0, 0, 1, 1], [], []>} : vector<8x32xf32>, vector<32x128xf32>, vector<8x128xf32> -> vector<8x128xf32>
    %c0_3 = arith.constant 0 : index
    %c0_4 = arith.constant 0 : index
    %3 = vector.load %arg3[%c0_3, %c0_4] : memref<8x32xf32, #tpu.memory_space<vmem>>, vector<8x32xf32>
    %c0_5 = arith.constant 0 : index
    %c0_6 = arith.constant 0 : index
    %4 = vector.load %arg5[%c0_5, %c0_6] : memref<32x128xf32, #tpu.memory_space<vmem>>, vector<32x128xf32>
    %cst_7 = arith.constant dense<0.000000e+00> : vector<8x128xf32>
    %5 = tpu.matmul %3, %4, %cst_7 {dimension_numbers = #tpu.dot_dimension_numbers<[1], [0], [0], [1], [0, 0, 1, 1], [], []>} : vector<8x32xf32>, vector<32x128xf32>, vector<8x128xf32> -> vector<8x128xf32>
    %6 = arith.addf %2, %5 : vector<8x128xf32>
    %c0_8 = arith.constant 0 : index
    %c0_9 = arith.constant 0 : index
    %7 = vector.load %arg6[%c0_8, %c0_9] : memref<1x128xf32, #tpu.memory_space<vmem>>, vector<1x128xf32>
    %8 = vector.broadcast %7 : vector<1x128xf32> to vector<8x128xf32>
    %9 = arith.addf %6, %8 : vector<8x128xf32>
    %c0_10 = arith.constant 0 : index
    %c0_11 = arith.constant 0 : index
    %10 = vector.load %arg7[%c0_10, %c0_11] : memref<8x128xf32, #tpu.memory_space<vmem>>, vector<8x128xf32>
    tpu.vector_store %arg7[%c0_10, %c0_11], %9 {strides = array<i32>} : memref<8x128xf32, #tpu.memory_space<vmem>>, vector<8x128xf32>,
    return
  }
  func.func @transform_0(%arg0: i32, %arg1: i32) -> (i32, i32) {
    %c0_i32 = arith.constant 0 : i32
    %c0_i32_0 = arith.constant 0 : i32
    return %arg0, %c0_i32 : i32, i32
  }
  func.func @transform_1(%arg0: i32, %arg1: i32) -> (i32, i32) {
    %c0_i32 = arith.constant 0 : i32
    %c0_i32_0 = arith.constant 0 : i32
    return %arg0, %c0_i32 : i32, i32
  }
  func.func @transform_2(%arg0: i32, %arg1: i32) -> (i32, i32) {
    %c0_i32 = arith.constant 0 : i32
    %c0_i32_0 = arith.constant 0 : i32
    return %c0_i32, %arg1 : i32, i32
  }
  func.func @transform_3(%arg0: i32, %arg1: i32) -> (i32, i32) {
    %c0_i32 = arith.constant 0 : i32
    %c0_i32_0 = arith.constant 0 : i32
    return %c0_i32, %arg1 : i32, i32
  }
  func.func @transform_4(%arg0: i32, %arg1: i32) -> (i32, i32) {
    %c0_i32 = arith.constant 0 : i32
    %c0_i32_0 = arith.constant 0 : i32
    return %c0_i32, %arg1 : i32, i32
  }
  func.func @transform_5(%arg0: i32, %arg1: i32) -> (i32, i32) {
    %c0_i32 = arith.constant 0 : i32
    return %arg0, %arg1 : i32, i32
  }
}

</mosaic_0001>

<bundles_post_ra>
// kernel: tpu_custom_call.1
= control target key start
LH: loop header
LB: loop body
LE: loop exit
PB: predicated region body
PF: predicated region fallthrough
CT: control target
= control target key end

     0   :  { %10 = vsyncpa [#allocation3], 0  ;;  %s464_s0 = inlined_call_operand.hbm [shape: f32[8,32], index: 0, kind: input, shape index: {}]   ;;  %s465_s1 = inlined_call_operand.hbm [shape: f32[8,32], index: 1, kind: input, shape index: {}]   ;;  %s466_s2 = inlined_call_operand.hbm [shape: f32[32,128], index: 2, kind: input, shape index: {}]   ;;  %s467_s3 = inlined_call_operand.hbm [shape: f32[32,128], index: 3, kind: input, shape index: {}]   ;;  %s468_s4 = inlined_call_operand.vmem [shape: f32[1,128], index: 4, kind: input, shape index: {}]   ;;  %s469_s5 = inlined_call_operand.hbm [shape: f32[8,128], index: 5, kind: output, shape index: {}]  }
   0x1   :  { %11 = vsyncpa [#allocation6], 0 }
   0x2   :  { %12 = vsyncpa [#allocation9], 0 }
   0x3   :  { %13 = vsyncpa [#allocation4], 0  ;;  %s407_s18 = smov [#allocation5]   ;;  %s408_s20 = smov [#allocation2]  }
   0x4   :  { %s30_s19 = sshll.u32 %s407_s18, 4  ;;  %s20_s21 = sshll.u32 %s408_s20, 4  ;;  %s31_s19 = int_to_ptr.vmem [resolvable:$true] %s30_s19  ;;  %s21_s21 = int_to_ptr.vmem [resolvable:$true] %s20_s21 }
   0x5   :  { %s307_s22 = scalar_lea.vmem %s31_s19, 128  ;;  %p312_p1 = scmp.lt.s32.totalorder %s31_s19, %s31_s19 }
   0x6   :  { %p308_p0 = scmp.ne.s32.totalorder %s31_s19, %s307_s22  ;;  %p313_p2 = scmp.lt.s32.totalorder %s307_s22, %s307_s22 }
   0x8   :  { %p314_p3 = por %p313_p2, %p312_p1 }
   0xa   :  { %p315_p4 = pnand %p314_p3, %p308_p0 }
   0xc   :  { %318 = shalt.err (!%p315_p4)
}
   0xd   :  { %33 = dma.hbm_to_vmem [thread:$0]  %s465_s1, 128, %s31_s19, [#allocation6]  }
   0xe   :  { %s327_s25 = scalar_lea.vmem %s21_s21, 128  ;;  %p332_p6 = scmp.lt.s32.totalorder %s21_s21, %s21_s21 }
   0xf   :  { %p328_p5 = scmp.ne.s32.totalorder %s21_s21, %s327_s25  ;;  %p333_p7 = scmp.lt.s32.totalorder %s327_s25, %s327_s25 }
  0x11   :  { %p334_p8 = por %p333_p7, %p332_p6 }
  0x13   :  { %p335_p9 = pnand %p334_p8, %p328_p5 }
  0x15   :  { %338 = shalt.err (!%p335_p9)
}
  0x16   :  { %23 = dma.hbm_to_vmem [thread:$0]  %s464_s0, 128, %s21_s21, [#allocation3]  }
  0x17   :  { %s409_s28 = smov [#allocation7]  }
  0x18   :  { %s39_s29 = sshll.u32 %s409_s28, 4  ;;  %s40_s29 = int_to_ptr.vmem [resolvable:$true] %s39_s29 }
  0x19   :  { %s347_s30 = scalar_lea.vmem %s40_s29, 512  ;;  %p352_p11 = scmp.lt.s32.totalorder %s40_s29, %s40_s29 }
  0x1a   :  { %p348_p10 = scmp.ne.s32.totalorder %s40_s29, %s347_s30  ;;  %p353_p12 = scmp.lt.s32.totalorder %s347_s30, %s347_s30 }
  0x1c   :  { %p354_p13 = por %p353_p12, %p352_p11 }
  0x1e   :  { %p355_p0 = pnand %p354_p13, %p348_p10 }
  0x20   :  { %358 = shalt.err (!%p355_p0)
}
  0x21   :  { %s410_s1 = smov 128   ;;  %s411_s6 = smov 8  }
  0x22   :  { %45 = dma.hbm_to_vmem [thread:$0]  %s466_s2, 512, %s40_s29, [#allocation6], %s410_s1, %s410_s1, %s411_s6  }
  0x23   :  { %s412_s9 = smov [#allocation8]  }
  0x24   :  { %s51_s10 = sshll.u32 %s412_s9, 4  ;;  %s52_s10 = int_to_ptr.vmem [resolvable:$true] %s51_s10 }
  0x25   :  { %s367_s0 = scalar_lea.vmem %s52_s10, 512  ;;  %p372_p2 = scmp.lt.s32.totalorder %s52_s10, %s52_s10 }
  0x26   :  { %p368_p1 = scmp.ne.s32.totalorder %s52_s10, %s367_s0  ;;  %p373_p3 = scmp.lt.s32.totalorder %s367_s0, %s367_s0 }
  0x28   :  { %p374_p4 = por %p373_p3, %p372_p2 }
  0x2a   :  { %p375_p5 = pnand %p374_p4, %p368_p1 }
  0x2c   :  { %378 = shalt.err (!%p375_p5)
}
  0x2d   :  { %57 = dma.hbm_to_vmem [thread:$0]  %s467_s3, 512, %s52_s10, [#allocation9], %s410_s1, %s410_s1, %s411_s6  }
  0x2e   :  { %399 = dma.done.wait [#allocation3], 128  }
  0x2f   :  { %400 = vsyncadd [#allocation3], 4294967168 }
  0x30   :  { %401 = dma.done.wait [#allocation6], 640  }
  0x31   :  { %402 = vsyncadd [#allocation6], 4294966656 }
  0x32   :  { %403 = dma.done.wait [#allocation9], 512  }
  0x33   :  { %404 = vsyncadd [#allocation9], 4294966784  ;;  %v413_v0 = vmov 0.0   ;;  %vm414_vm0 = vmmov 0   ;;  %v81_v1 = vld [vmem:[#allocation8 + $0x18] sm:$0xff]  ;;  %v80_v3 = vld [vmem:[#allocation8 + $0x10] sm:$0xff] }
  0x34   :  { %268 = vmatprep.subr.mxu0 %v413_v0  ;;  %279 = vmatprep.subr.mxu1 %v413_v0  ;;  %v76_v2 = vld [vmem:[#allocation7 + $0x18] sm:$0xff]  ;;  %v75_v4 = vld [vmem:[#allocation7 + $0x10] sm:$0xff]  ;;  %v79_v5 = vld [vmem:[#allocation8 + $0x8] sm:$0xff]  ;;  %vm82_vm1 = vcmask 261120   ;;  %s415_s13 = smov [#allocation10]  }
  0x35   :  { %276 = vmatprep.mubr.msk.f32.mxu0 %vm414_vm0, %v413_v0  ;;  %287 = vmatprep.mubr.msk.f32.mxu1 %vm414_vm0, %v413_v0  ;;  %v74_v6 = vld [vmem:[#allocation7 + $0x8] sm:$0xff]  ;;  %v78_v7 = vld [vmem:[#allocation8] sm:$0xff]  ;;  %v77_v9 = vld [vmem:[#allocation5] sm:$0xff]  ;;  %s244_s14 = sshll.u32 %s415_s13, 4  ;;  %s245_s14 = int_to_ptr.vmem [resolvable:$true] %s244_s14 }
  0x36   :  { %269 = vmatpush3.msra.mxu0 %v81_v1  ;;  %280 = vmatpush3.msra.mxu1 %v76_v2  ;;  %v73_v8 = vld [vmem:[#allocation7] sm:$0xff]  ;;  %v72_v10 = vld [vmem:[#allocation2] sm:$0xff]  ;;  %s379_s15 = scalar_lea.vmem %s245_s14, 128  ;;  %p384_p7 = scmp.lt.s32.totalorder %s245_s14, %s245_s14 }
  0x37   :  { %270 = vmatprep.subr.mxu0 %v413_v0  ;;  %281 = vmatprep.subr.mxu1 %v413_v0  ;;  %v257_v13 = vld [vmem:[%s468_s4] ss:$0 sm:$0xff]  ;;  %p380_p6 = scmp.ne.s32.totalorder %s245_s14, %s379_s15  ;;  %p385_p8 = scmp.lt.s32.totalorder %s379_s15, %s379_s15 }
  0x38   :  { %271 = vmatpush3.msra.mxu0 %v80_v3  ;;  %282 = vmatpush3.msra.mxu1 %v75_v4 }
  0x39   :  { %272 = vmatprep.subr.mxu0 %v413_v0  ;;  %283 = vmatprep.subr.mxu1 %v413_v0  ;;  %p386_p9 = por %p385_p8, %p384_p7 }
  0x3a   :  { %273 = vmatpush3.msra.mxu0 %v79_v5  ;;  %284 = vmatpush3.msra.mxu1 %v74_v6 }
  0x3b   :  { %274 = vmatprep.subr.mxu0 %v413_v0  ;;  %285 = vmatprep.subr.mxu1 %v413_v0  ;;  %p387_p10 = pnand %p386_p9, %p380_p6 }
  0x3c   :  { %275 = vmatpush3.msra.mxu0 %v78_v7  ;;  %286 = vmatpush3.msra.mxu1 %v73_v8 }
  0x3d   :  { %277 = vmatmul.mubr.msk.f32.vlgmr.msra.gmra.mxu0 %vm82_vm1, %v77_v9  ;;  %288 = vmatmul.mubr.msk.f32.vlgmr.msra.gmra.mxu1 %vm82_vm1, %v72_v10 }
  0xfd   :  { %v152_v11 = vpop.f32.mrf.mxu0  ;;  %v225_v12 = vpop.f32.mrf.mxu1 }
  0xfe   :  { %v226_v14 = vadd.f32 %v225_v12, %v152_v11 }
  0xff   :  { %v278_v15 = vpop.f32.mrf.mxu0  ;;  %v289_v16 = vpop.f32.mrf.mxu1 }
 0x100   :  { %v236_v17 = vadd.f32 %v257_v13, %v226_v14 }
 0x102   :  { %237 = vst [vmem:[#allocation10] sm:$0xff] %v236_v17 }
 0x103   :  { %390 = shalt.err (!%p387_p10)
}
 0x104   :  { %247 = dma.vmem_to_hbm [thread:$0]  %s245_s14, 128, %s469_s5, [#allocation4]  }
 0x105   :  { %405 = dma.done.wait [#allocation4], 128  }
 0x106   :  { %406 = vsyncadd [#allocation4], 4294967168 }
 0x107   :  { %251 = vsyncpa [#allocation3], 1 }
 0x108   :  { %252 = vsyncpa [#allocation6], 1 }
 0x109   :  { %253 = vsyncpa [#allocation9], 1 }
 0x10a   :  { %254 = vsyncpa [#allocation4], 1 }

</bundles_post_ra>
